<compile_context>
chip_gen: v7x
topology: tpu7x:2x2x1
jax: 0.10.0
libtpu: 0.0.40
codegen_flags: <defaults>
</compile_context>

<pallas_src>
import jax
import jax.numpy as jnp
from jax import lax
from jax.experimental import pallas as pl
from jax.experimental.pallas import tpu as pltpu


# ---------------------------------------------------------------------------
# helpers
# ---------------------------------------------------------------------------
def _block(n, cap):
    """Largest divisor of n that is <= cap (so the grid tiles n exactly)."""
    d = min(n, cap)
    while n % d:
        d -= 1
    return d


def _batch_block(b):
    """Split the batch into two 'parallel' blocks when it is large enough
    (v7x megacore); blocks stay a multiple of 8 (sublane) or the full batch."""
    if b % 16 == 0:
        return b // 2
    return b


# ---------------------------------------------------------------------------
# Pallas kernels
# ---------------------------------------------------------------------------
def gru_input_proj_kernel(x_ref, wx_ref, b_ref, xg_ref):
    """xg = x @ Wx_fused + b_fused over a block of timesteps (fully parallel).

    x_ref:  (Tb, B, E_in)  f32 or bf16
    wx_ref: (E_in, 3H)     bf16 fused gate weights (r, z, n)
    b_ref:  (1, 3H)        f32  pre-folded bias: (bx_r+bh_r, bx_z+bh_z, bx_n)
    xg_ref: (Tb, B, 3H)    f32
    """
    tb, bb, e = x_ref.shape
    g = wx_ref.shape[-1]
    x2d = x_ref[...].reshape(tb * bb, e).astype(jnp.bfloat16)
    acc = jnp.dot(x2d, wx_ref[...], preferred_element_type=jnp.float32)
    xg_ref[...] = (acc + b_ref[...]).reshape(tb, bb, g)


def gru_recurrence_kernel(xg_ref, wh_ref, bhn_ref, y_ref, h_ref):
    """Serial GRU recurrence over one block of Tb timesteps (intermediate layer).

    xg_ref:  (Tb, Bb, 3H) f32  precomputed x@Wx + folded biases
    wh_ref:  (H, 3H)      bf16 fused hidden->gate weights (r, z, n)
    bhn_ref: (1, H)       f32  hidden bias of the n gate
    y_ref:   (Tb, Bb, H)  bf16 per-timestep hidden output
    h_ref:   (Bb, H)      f32  VMEM scratch carrying h_{t-1} across time blocks
    """
    t_blk = pl.program_id(1)

    @pl.when(t_blk == 0)
    def _():
        h_ref[...] = jnp.zeros_like(h_ref)  # h_0 = 0 (matches _init_state)

    hdim = h_ref.shape[-1]
    tb = xg_ref.shape[0]
    wh = wh_ref[...]
    bhn = bhn_ref[...]

    def step(i, carry):
        h_prev = h_ref[...]
        xg = xg_ref[i]                                            # (Bb, 3H) f32
        hg = jnp.dot(h_prev.astype(jnp.bfloat16), wh,
                     preferred_element_type=jnp.float32)          # (Bb, 3H) f32
        r = jax.nn.sigmoid(xg[:, :hdim] + hg[:, :hdim])
        z = jax.nn.sigmoid(xg[:, hdim:2 * hdim] + hg[:, hdim:2 * hdim])
        n = jnp.tanh(xg[:, 2 * hdim:] + r * (hg[:, 2 * hdim:] + bhn))
        h_new = (1.0 - z) * n + z * h_prev
        h_ref[...] = h_new
        y_ref[i] = h_new.astype(y_ref.dtype)
        return carry

    lax.fori_loop(0, tb, step, 0, unroll=True)


def gru_recurrence_last_kernel(xg_ref, wh_ref, bhn_ref, wo_ref, bo_ref,
                               out_ref, h_ref):
    """Last GRU layer: same recurrence, but no per-timestep output is written;
    the final Linear (h_T @ W_out^T + b_out) is fused into the epilogue.

    wo_ref:  (H, C) bf16   bo_ref: (1, C) f32   out_ref: (Bb, C) f32
    """
    t_blk = pl.program_id(1)

    @pl.when(t_blk == 0)
    def _():
        h_ref[...] = jnp.zeros_like(h_ref)

    hdim = h_ref.shape[-1]
    tb = xg_ref.shape[0]
    wh = wh_ref[...]
    bhn = bhn_ref[...]

    def step(i, carry):
        h_prev = h_ref[...]
        xg = xg_ref[i]
        hg = jnp.dot(h_prev.astype(jnp.bfloat16), wh,
                     preferred_element_type=jnp.float32)
        r = jax.nn.sigmoid(xg[:, :hdim] + hg[:, :hdim])
        z = jax.nn.sigmoid(xg[:, hdim:2 * hdim] + hg[:, hdim:2 * hdim])
        n = jnp.tanh(xg[:, 2 * hdim:] + r * (hg[:, 2 * hdim:] + bhn))
        h_ref[...] = (1.0 - z) * n + z * h_prev
        return carry

    lax.fori_loop(0, tb, step, 0, unroll=True)

    @pl.when(t_blk == pl.num_programs(1) - 1)
    def _():
        h_t = h_ref[...].astype(jnp.bfloat16)
        out_ref[...] = (jnp.dot(h_t, wo_ref[...],
                                preferred_element_type=jnp.float32)
                        + bo_ref[...])


# ---------------------------------------------------------------------------
# Wrappers
# ---------------------------------------------------------------------------
_VMEM_LIMIT = 64 * 1024 * 1024


def gru_input_proj(x_tbe, wx, b_in):
    t, b, e = x_tbe.shape
    g = wx.shape[-1]
    tb = _block(t, 128)
    return pl.pallas_call(
        gru_input_proj_kernel,
        out_shape=jax.ShapeDtypeStruct((t, b, g), jnp.float32),
        grid_spec=pltpu.PrefetchScalarGridSpec(
            num_scalar_prefetch=0,
            grid=(t // tb,),
            in_specs=[
                pl.BlockSpec((tb, b, e), lambda i: (i, 0, 0)),
                pl.BlockSpec((e, g), lambda i: (0, 0)),
                pl.BlockSpec((1, g), lambda i: (0, 0)),
            ],
            out_specs=pl.BlockSpec((tb, b, g), lambda i: (i, 0, 0)),
        ),
        compiler_params=pltpu.CompilerParams(
            dimension_semantics=("parallel",),
            vmem_limit_bytes=_VMEM_LIMIT,
        ),
    )(x_tbe, wx, b_in)


def gru_recurrence(xg, wh, bh_n):
    t, b, g = xg.shape
    h = wh.shape[0]
    tb = _block(t, 32)
    bb = _batch_block(b)
    return pl.pallas_call(
        gru_recurrence_kernel,
        out_shape=jax.ShapeDtypeStruct((t, b, h), jnp.bfloat16),
        grid_spec=pltpu.PrefetchScalarGridSpec(
            num_scalar_prefetch=0,
            grid=(b // bb, t // tb),
            in_specs=[
                pl.BlockSpec((tb, bb, g), lambda bi, ti: (ti, bi, 0)),
                pl.BlockSpec((h, g), lambda bi, ti: (0, 0)),
                pl.BlockSpec((1, h), lambda bi, ti: (0, 0)),
            ],
            out_specs=pl.BlockSpec((tb, bb, h), lambda bi, ti: (ti, bi, 0)),
            scratch_shapes=[pltpu.VMEM((bb, h), jnp.float32)],
        ),
        compiler_params=pltpu.CompilerParams(
            dimension_semantics=("parallel", "arbitrary"),
            vmem_limit_bytes=_VMEM_LIMIT,
        ),
    )(xg, wh, bh_n)


def gru_recurrence_last(xg, wh, bh_n, w_out, b_out):
    t, b, g = xg.shape
    h = wh.shape[0]
    c = w_out.shape[-1]
    tb = _block(t, 32)
    bb = _batch_block(b)
    return pl.pallas_call(
        gru_recurrence_last_kernel,
        out_shape=jax.ShapeDtypeStruct((b, c), jnp.float32),
        grid_spec=pltpu.PrefetchScalarGridSpec(
            num_scalar_prefetch=0,
            grid=(b // bb, t // tb),
            in_specs=[
                pl.BlockSpec((tb, bb, g), lambda bi, ti: (ti, bi, 0)),
                pl.BlockSpec((h, g), lambda bi, ti: (0, 0)),
                pl.BlockSpec((1, h), lambda bi, ti: (0, 0)),
                pl.BlockSpec((h, c), lambda bi, ti: (0, 0)),
                pl.BlockSpec((1, c), lambda bi, ti: (0, 0)),
            ],
            out_specs=pl.BlockSpec((bb, c), lambda bi, ti: (bi, 0)),
            scratch_shapes=[pltpu.VMEM((bb, h), jnp.float32)],
        ),
        compiler_params=pltpu.CompilerParams(
            dimension_semantics=("parallel", "arbitrary"),
            vmem_limit_bytes=_VMEM_LIMIT,
        ),
    )(xg, wh, bh_n, w_out, b_out)


# ---------------------------------------------------------------------------
# Parameters & model forward
# ---------------------------------------------------------------------------
def init_params(key, n_layers, hidden_dim, n_vocab, embed_dim, n_classes):
    keys = jax.random.split(key, 2 + 4 * n_layers)
    scale = 1.0 / jnp.sqrt(hidden_dim)
    hd = hidden_dim
    params = {
        "embed": jax.random.normal(keys[0], (n_vocab, embed_dim), jnp.float32),
        "wx": [], "wh": [], "b_in": [], "bh_n": [],
    }
    for l in range(n_layers):
        in_dim = embed_dim if l == 0 else hidden_dim
        k = keys[2 + 4 * l: 2 + 4 * (l + 1)]
        # fused gate layout, order (r, z, n) as in torch.nn.GRU, stored transposed for x @ W
        wx = jax.random.uniform(k[0], (in_dim, 3 * hd), jnp.float32, -scale, scale)
        wh = jax.random.uniform(k[1], (hd, 3 * hd), jnp.float32, -scale, scale)
        bx = jax.random.uniform(k[2], (1, 3 * hd), jnp.float32, -scale, scale)
        bh = jax.random.uniform(k[3], (1, 3 * hd), jnp.float32, -scale, scale)
        # fold: b_in = bx + [bh_r, bh_z, 0];   bh_n kept separate (lives inside r*(...))
        bh_rz = jnp.concatenate([bh[:, :2 * hd], jnp.zeros((1, hd), jnp.float32)], axis=1)
        params["wx"].append(wx.astype(jnp.bfloat16))
        params["wh"].append(wh.astype(jnp.bfloat16))
        params["b_in"].append(bx + bh_rz)
        params["bh_n"].append(bh[:, 2 * hd:])
    params["w_out"] = jax.random.uniform(
        keys[1], (hd, n_classes), jnp.float32, -scale, scale).astype(jnp.bfloat16)
    params["b_out"] = jnp.zeros((1, n_classes), jnp.float32)
    return params


def gru_model_forward(tokens, params, n_layers):
    """tokens: int32 [B, T] -> logits f32 [B, n_classes]"""
    # Embedding gather directly into the time-major layout (transpose only the
    # tiny [B, T] int token matrix, never the [B, T, E] activation tensor).
    x = jnp.take(params["embed"], tokens.T, axis=0)              # [T, B, E] f32 (glue)
    logits = None
    for l in range(n_layers):
        xg = gru_input_proj(x, params["wx"][l], params["b_in"][l])   # [T, B, 3H] parallel
        if l < n_layers - 1:
            x = gru_recurrence(xg, params["wh"][l], params["bh_n"][l])   # [T, B, H] bf16
        else:
            logits = gru_recurrence_last(xg, params["wh"][l], params["bh_n"][l],
                                         params["w_out"], params["b_out"])
    # NOTE: PyTorch forward calls self.dropout(h_t) but discards the result, so
    # it has no effect on the output; it is intentionally a no-op here.
    return logits


# ---------------------------------------------------------------------------
# Pure-JAX reference (same precision choices, for a sanity check only)
# ---------------------------------------------------------------------------
def gru_model_ref(tokens, params, n_layers):
    x = jnp.take(params["embed"], tokens.T, axis=0)              # [T, B, E]
    t, b, _ = x.shape
    h_last = None
    for l in range(n_layers):
        wx, wh = params["wx"][l], params["wh"][l]
        b_in, bhn = params["b_in"][l], params["bh_n"][l]
        hd = wh.shape[0]
        xg = (jnp.dot(x.reshape(t * b, -1).astype(jnp.bfloat16), wx,
                      preferred_element_type=jnp.float32).reshape(t, b, -1) + b_in)

        def step(h, xg_t, wh=wh, bhn=bhn, hd=hd):
            hg = jnp.dot(h.astype(jnp.bfloat16), wh, preferred_element_type=jnp.float32)
            r = jax.nn.sigmoid(xg_t[:, :hd] + hg[:, :hd])
            z = jax.nn.sigmoid(xg_t[:, hd:2 * hd] + hg[:, hd:2 * hd])
            n = jnp.tanh(xg_t[:, 2 * hd:] + r * (hg[:, 2 * hd:] + bhn))
            h_new = (1.0 - z) * n + z * h
            return h_new, h_new

        h_last, ys = lax.scan(step, jnp.zeros((b, hd), jnp.float32), xg)
        x = ys.astype(jnp.bfloat16)
    return (jnp.dot(h_last.astype(jnp.bfloat16), params["w_out"],
                    preferred_element_type=jnp.float32) + params["b_out"])


if __name__ == "__main__":
    # Small, forward-consistent shapes
    n_layers, hidden_dim, n_vocab, embed_dim, n_classes = 2, 32, 50, 32, 4
    B, T = 2, 8

    key = jax.random.PRNGKey(0)
    k_tok, k_par = jax.random.split(key)
    tokens = jax.random.randint(k_tok, (B, T), 0, n_vocab, dtype=jnp.int32)
    params = init_params(k_par, n_layers, hidden_dim, n_vocab, embed_dim, n_classes)

    logits = gru_model_forward(tokens, params, n_layers)
    logits = jax.block_until_ready(logits)

    ref = jax.block_until_ready(gru_model_ref(tokens, params, n_layers))
    assert logits.shape == (B, n_classes)
    assert jnp.allclose(logits, ref, atol=1e-2, rtol=1e-2)

    print("KERNEL_OK")
</pallas_src>

<mosaic_0001>
module attributes {stable_mosaic.version = 11 : i64} {
  func.func @gru_input_proj_kernel(%arg0: i32, %arg1: memref<8x2x32xf32, #tpu.memory_space<vmem>>, %arg2: memref<32x96xbf16, #tpu.memory_space<vmem>>, %arg3: memref<1x96xf32, #tpu.memory_space<vmem>>, %arg4: memref<8x2x96xf32, #tpu.memory_space<vmem>>) attributes {dimension_semantics = [#tpu.dimension_semantics<parallel>], iteration_bounds = array<i64: 1>, scalar_prefetch = 0 : i64, scratch_operands = 0 : i64, tpu.core_type = #tpu.core_type<tc>, window_params = [{transform_indices = @transform_0, window_bounds = array<i64: 8, 2, 32>}, {pipeline_mode = #tpu.pipeline_mode<synchronous>, transform_indices = @transform_1, window_bounds = array<i64: 32, 96>}, {pipeline_mode = #tpu.pipeline_mode<synchronous>, transform_indices = @transform_2, window_bounds = array<i64: 1, 96>}, {transform_indices = @transform_3, window_bounds = array<i64: 8, 2, 96>}]} {
    %c0 = arith.constant 0 : index
    %c0_0 = arith.constant 0 : index
    %c0_1 = arith.constant 0 : index
    %0 = vector.load %arg1[%c0, %c0_0, %c0_1] : memref<8x2x32xf32, #tpu.memory_space<vmem>>, vector<8x2x32xf32>
    %1 = vector.shape_cast %0 : vector<8x2x32xf32> to vector<16x32xf32>
    %2 = arith.truncf %1 : vector<16x32xf32> to vector<16x32xbf16>
    %c0_2 = arith.constant 0 : index
    %c0_3 = arith.constant 0 : index
    %3 = vector.load %arg2[%c0_2, %c0_3] : memref<32x96xbf16, #tpu.memory_space<vmem>>, vector<32x96xbf16>
    %cst = arith.constant dense<0.000000e+00> : vector<16x96xf32>
    %4 = tpu.matmul %2, %3, %cst {dimension_numbers = #tpu.dot_dimension_numbers<[1], [0], [0], [1], [0, 0, 1, 1], [], []>} : vector<16x32xbf16>, vector<32x96xbf16>, vector<16x96xf32> -> vector<16x96xf32>
    %c0_4 = arith.constant 0 : index
    %c0_5 = arith.constant 0 : index
    %5 = vector.load %arg3[%c0_4, %c0_5] : memref<1x96xf32, #tpu.memory_space<vmem>>, vector<1x96xf32>
    %6 = vector.broadcast %5 : vector<1x96xf32> to vector<16x96xf32>
    %7 = arith.addf %4, %6 : vector<16x96xf32>
    %8 = vector.shape_cast %7 : vector<16x96xf32> to vector<8x2x96xf32>
    %c0_6 = arith.constant 0 : index
    %c0_7 = arith.constant 0 : index
    %c0_8 = arith.constant 0 : index
    %9 = vector.load %arg4[%c0_6, %c0_7, %c0_8] : memref<8x2x96xf32, #tpu.memory_space<vmem>>, vector<8x2x96xf32>
    tpu.vector_store %arg4[%c0_6, %c0_7, %c0_8], %8 {strides = array<i32>} : memref<8x2x96xf32, #tpu.memory_space<vmem>>, vector<8x2x96xf32>,
    return
  }
  func.func @transform_0(%arg0: i32) -> (i32, i32, i32) {
    %c0_i32 = arith.constant 0 : i32
    %c0_i32_0 = arith.constant 0 : i32
    %c0_i32_1 = arith.constant 0 : i32
    return %arg0, %c0_i32, %c0_i32_0 : i32, i32, i32
  }
  func.func @transform_1(%arg0: i32) -> (i32, i32) {
    %c0_i32 = arith.constant 0 : i32
    %c0_i32_0 = arith.constant 0 : i32
    %c0_i32_1 = arith.constant 0 : i32
    return %c0_i32, %c0_i32_0 : i32, i32
  }
  func.func @transform_2(%arg0: i32) -> (i32, i32) {
    %c0_i32 = arith.constant 0 : i32
    %c0_i32_0 = arith.constant 0 : i32
    %c0_i32_1 = arith.constant 0 : i32
    return %c0_i32, %c0_i32_0 : i32, i32
  }
  func.func @transform_3(%arg0: i32) -> (i32, i32, i32) {
    %c0_i32 = arith.constant 0 : i32
    %c0_i32_0 = arith.constant 0 : i32
    %c0_i32_1 = arith.constant 0 : i32
    return %arg0, %c0_i32, %c0_i32_0 : i32, i32, i32
  }
}

</mosaic_0001>

<bundles_post_ra>
// kernel: tpu_custom_call.1
= control target key start
LH: loop header
LB: loop body
LE: loop exit
PB: predicated region body
PF: predicated region fallthrough
CT: control target
= control target key end

     0   :  { %8 = vsyncpa [#allocation3], 0  ;;  %s462_s0 = inlined_call_operand.hbm [shape: f32[8,2,32], index: 0, kind: input, shape index: {}]   ;;  %s463_s1 = inlined_call_operand.hbm [shape: bf16[32,96], index: 1, kind: input, shape index: {}]   ;;  %s464_s2 = inlined_call_operand.hbm [shape: f32[1,96], index: 2, kind: input, shape index: {}]   ;;  %s465_s3 = inlined_call_operand.hbm [shape: f32[8,2,96], index: 3, kind: output, shape index: {}]  }
   0x1   :  { %9 = vsyncpa [#allocation6], 0 }
   0x2   :  { %10 = vsyncpa [#allocation4], 0  ;;  %s369_s12 = smov [#allocation5]   ;;  %s275_s16 = scalar_lea.hbm %s463_s1, 256 }
   0x3   :  { %s28_s13 = sshll.u32 %s369_s12, 4  ;;  %p276_p0 = scmp.ne.s32.totalorder %s463_s1, %s275_s16  ;;  %s29_s13 = int_to_ptr.vmem [resolvable:$true] %s28_s13 }
   0x4   :  { %p279_p1 = scmp.lt.u32.totalorder %s275_s16, %s463_s1 }
   0x6   :  { %p281_p2 = pnand %p279_p1, %p276_p0 }
   0x8   :  { %284 = shalt.err (!%p281_p2)
}
   0x9   :  { %s285_s21 = scalar_lea.vmem %s29_s13, 256  ;;  %p290_p4 = scmp.lt.s32.totalorder %s29_s13, %s29_s13 }
   0xa   :  { %p286_p3 = scmp.ne.s32.totalorder %s29_s13, %s285_s21  ;;  %p291_p5 = scmp.lt.s32.totalorder %s285_s21, %s285_s21 }
   0xc   :  { %p292_p6 = por %p291_p5, %p290_p4 }
   0xe   :  { %p293_p7 = pnand %p292_p6, %p286_p3 }
  0x10   :  { %296 = shalt.err (!%p293_p7)
}
  0x11   :  { %s370_s22 = smov 64   ;;  %s371_s23 = smov 4  }
  0x12   :  { %34 = dma.hbm_to_vmem [thread:$0]  %s463_s1, 256, %s29_s13, [#allocation6], %s370_s22, %s370_s22, %s371_s23  }
  0x13   :  { %s372_s26 = smov [#allocation2]   ;;  %s297_s30 = scalar_lea.hbm %s462_s0, 256 }
  0x14   :  { %s16_s27 = sshll.u32 %s372_s26, 4  ;;  %p298_p8 = scmp.ne.s32.totalorder %s462_s0, %s297_s30  ;;  %s17_s27 = int_to_ptr.vmem [resolvable:$true] %s16_s27 }
  0x15   :  { %p301_p9 = scmp.lt.u32.totalorder %s297_s30, %s462_s0 }
  0x17   :  { %p303_p10 = pnand %p301_p9, %p298_p8 }
  0x19   :  { %306 = shalt.err (!%p303_p10)
}
  0x1a   :  { %s307_s8 = scalar_lea.vmem %s17_s27, 256  ;;  %p312_p12 = scmp.lt.s32.totalorder %s17_s27, %s17_s27 }
  0x1b   :  { %p308_p11 = scmp.ne.s32.totalorder %s17_s27, %s307_s8  ;;  %p313_p13 = scmp.lt.s32.totalorder %s307_s8, %s307_s8 }
  0x1d   :  { %p314_p0 = por %p313_p13, %p312_p12 }
  0x1f   :  { %p315_p1 = pnand %p314_p0, %p308_p11 }
  0x21   :  { %318 = shalt.err (!%p315_p1)
}
  0x22   :  { %s373_s1 = smov 32   ;;  %s374_s9 = smov 2  }
  0x23   :  { %22 = dma.hbm_to_vmem [thread:$0]  %s462_s0, 256, %s17_s27, [#allocation3], %s373_s1, %s373_s1, %s374_s9  }
  0x24   :  { %s375_s12 = smov [#allocation7]   ;;  %s319_s16 = scalar_lea.hbm %s464_s2, 16 }
  0x25   :  { %s41_s13 = sshll.u32 %s375_s12, 4  ;;  %p320_p2 = scmp.ne.s32.totalorder %s464_s2, %s319_s16  ;;  %s42_s13 = int_to_ptr.vmem [resolvable:$true] %s41_s13 }
  0x26   :  { %p323_p3 = scmp.lt.u32.totalorder %s319_s16, %s464_s2 }
  0x28   :  { %p325_p4 = pnand %p323_p3, %p320_p2 }
  0x2a   :  { %328 = shalt.err (!%p325_p4)
}
  0x2b   :  { %s329_s21 = scalar_lea.vmem %s42_s13, 16  ;;  %s333_s0 = scalar_lea.vmem %s42_s13, 32 }
  0x2c   :  { %p330_p5 = scmp.ne.s32.totalorder %s42_s13, %s329_s21  ;;  %p334_p6 = scmp.lt.s32.totalorder %s42_s13, %s42_s13 }
  0x2d   :  { %p335_p7 = scmp.lt.s32.totalorder %s333_s0, %s329_s21 }
  0x2f   :  { %p336_p8 = por %p335_p7, %p334_p6 }
  0x31   :  { %p337_p9 = pnand %p336_p8, %p330_p5 }
  0x33   :  { %340 = shalt.err (!%p337_p9)
}
  0x34   :  { %44 = dma.hbm_to_vmem [thread:$0]  %s464_s2, 16, %s42_s13, [#allocation6]  }
  0x35   :  { %363 = dma.done.wait [#allocation3], 256  }
  0x36   :  { %364 = vsyncadd [#allocation3], 4294967040 }
  0x37   :  { %365 = dma.done.wait [#allocation6], 272  }
  0x38   :  { %366 = vsyncadd [#allocation6], 4294967024  ;;  %v76_v0 = vlaneseq  ;;  %v376_v1 = vmov 0.0   ;;  %vm377_vm0 = vmmov 0   ;;  %v378_v2 = vmov 1983009808  }
  0x39   :  { %254 = vmatprep.subr.bf16.mxu0 %v376_v1  ;;  %258 = vmatprep.mubr.msk.bf16.mxu0 %vm377_vm0, %v376_v1  ;;  %v74_v3 = vunpack.c.l.s4 %v378_v2  ;;  %v273_v6 = vld [vmem:[#allocation5] sm:$0xff]   ;;  %v274_v7 = vld [vmem:[#allocation5 + $0x8] sm:$0xff]   ;;  %v55_v9 = vld [vmem:[#allocation2] sm:$0x3]  ;;  %vm131_vm1 = vcmask 261120   ;;  %vm220_vm2 = vcmask 779264  }
  0x3a   :  { %v77_v5 = vshrl.u32 %v76_v0, 7  ;;  %255 = vmatpush3.bf16.msra.mxu0 %v273_v6  ;;  %v56_v10 = vld [vmem:[#allocation2 + $0x2] sm:$0x3]  ;;  %v57_v11 = vld [vmem:[#allocation2 + $0x4] sm:$0x3]  ;;  %s379_s2 = smov [#allocation8]  }
  0x3b   :  { %v75_v4 = vunpack.c.0.s8 %v74_v3  ;;  %256 = vmatprep.subr.bf16.mxu0 %v376_v1  ;;  %v58_v12 = vld [vmem:[#allocation2 + $0x6] sm:$0x3]  ;;  %v59_v13 = vld [vmem:[#allocation2 + $0x8] sm:$0x3]  ;;  %v60_v14 = vld [vmem:[#allocation2 + $0xa] sm:$0x3]  ;;  %v71_v15 = vcombine.low %v55_v9, %v56_v10 }
  0x3c   :  { %v61_v16 = vld [vmem:[#allocation2 + $0xc] sm:$0x3]  ;;  %v62_v17 = vld [vmem:[#allocation2 + $0xe] sm:$0x3]  ;;  %v72_v18 = vcombine.low %v57_v11, %v58_v12  ;;  %v88_v19 = vcombine.low %v59_v13, %v60_v14  ;;  %v247_v28 = vld [vmem:[#allocation7] ss:$0 sm:$0xff] }
  0x3d   :  { %v78_v8 = vsub.s32 %v75_v4, %v77_v5  ;;  %v89_v21 = vcombine.low %v61_v16, %v62_v17  ;;  %s234_s24 = sshll.u32 %s379_s2, 4  ;;  %s235_s24 = int_to_ptr.vmem [resolvable:$true] %s234_s24 }
  0x3e   :  { %257 = vmatpush3.bf16.msra.mxu0 %v274_v7  ;;  %s341_s25 = scalar_lea.vmem %s235_s24, 256  ;;  %p346_p11 = scmp.lt.s32.totalorder %s235_s24, %s235_s24 }
  0x3f   :  { %v79_v20 = vrot.slane %v71_v15, %v78_v8  ;;  %v86_v22 = vrot.slane %v72_v18, %v78_v8  ;;  %v96_v23 = vrot.slane %v88_v19, %v78_v8  ;;  %v103_v24 = vrot.slane %v89_v21, %v78_v8  ;;  %p342_p10 = scmp.ne.s32.totalorder %s235_s24, %s341_s25  ;;  %p347_p12 = scmp.lt.s32.totalorder %s341_s25, %s341_s25 }
  0x41   :  { %v87_v25 = vcombine.low %v79_v20, %v86_v22  ;;  %v104_v26 = vcombine.low %v96_v23, %v103_v24  ;;  %p348_p13 = por %p347_p12, %p346_p11 }
  0x43   :  { %v107_v27 = vpack.c.bf16 %v104_v26, %v87_v25  ;;  %p349_p0 = pnand %p348_p13, %p342_p10 }
  0x45   :  { %259 = vmatmul.mubr.msk.bf16.vlgmr.msra.gmra.mrb[0].mxu0 %vm131_vm1, %v107_v27 }
 0x118   :  { %v169_v29 = vpop.f32.mrb[0].mxu0 }
 0x119   :  { %v170_v30 = vadd.f32 %v247_v28, %v169_v29  ;;  %v260_v31 = vpop.f32.mrb[1].mxu0 }
 0x11a   :  { %v172_v32 = vpop.f32.mrb[2].mxu0 }
 0x11b   :  { %v178_v33 = vcombine.high %v170_v30, %v170_v30  ;;  %v185_v34 = vrot.slane %v170_v30, %v78_v8  ;;  %v173_v35 = vadd.f32 %v247_v28, %v172_v32  ;;  %v261_v36 = vpop.f32.mrb[3].mxu0 }
 0x11d   :  { %v192_v37 = vrot.slane %v178_v33, %v78_v8  ;;  %v193_v38 = vcombine.high %v185_v34, %v185_v34  ;;  %221 = vst.msk [vmem:[#allocation8] sm:$0x3] %vm220_vm2, %v185_v34  ;;  %v195_v39 = vcombine.high %v173_v35, %v173_v35  ;;  %v202_v40 = vrot.slane %v173_v35, %v78_v8 }
 0x11f   :  { %v194_v41 = vcombine.high %v192_v37, %v192_v37  ;;  %222 = vst.msk [vmem:[#allocation8 + $0x2] sm:$0x3] %vm220_vm2, %v193_v38  ;;  %223 = vst.msk [vmem:[#allocation8 + $0x4] sm:$0x3] %vm220_vm2, %v192_v37  ;;  %v209_v42 = vrot.slane %v195_v39, %v78_v8  ;;  %v210_v43 = vcombine.high %v202_v40, %v202_v40 }
 0x120   :  { %225 = vst.msk [vmem:[#allocation8 + $0x8] sm:$0x3] %vm220_vm2, %v202_v40 }
 0x121   :  { %224 = vst.msk [vmem:[#allocation8 + $0x6] sm:$0x3] %vm220_vm2, %v194_v41  ;;  %v211_v44 = vcombine.high %v209_v42, %v209_v42  ;;  %226 = vst.msk [vmem:[#allocation8 + $0xa] sm:$0x3] %vm220_vm2, %v210_v43 }
 0x122   :  { %227 = vst.msk [vmem:[#allocation8 + $0xc] sm:$0x3] %vm220_vm2, %v209_v42 }
 0x123   :  { %228 = vst.msk [vmem:[#allocation8 + $0xe] sm:$0x3] %vm220_vm2, %v211_v44 }
 0x124   :  { %352 = shalt.err (!%p349_p0)
}
 0x125   :  { %s353_s28 = scalar_lea.hbm %s465_s3, 256 }
 0x126   :  { %p354_p1 = scmp.ne.s32.totalorder %s465_s3, %s353_s28  ;;  %p357_p2 = scmp.lt.u32.totalorder %s353_s28, %s465_s3 }
 0x128   :  { %p359_p3 = pnand %p357_p2, %p354_p1 }
 0x12a   :  { %362 = shalt.err (!%p359_p3)
}
 0x12b   :  { %240 = dma.vmem_to_hbm [thread:$0]  %s235_s24, 256, %s465_s3, [#allocation4], %s373_s1, %s373_s1, %s374_s9  }
 0x12c   :  { %367 = dma.done.wait [#allocation4], 256  }
 0x12d   :  { %368 = vsyncadd [#allocation4], 4294967040 }
 0x12e   :  { %244 = vsyncpa [#allocation3], 1 }
 0x12f   :  { %245 = vsyncpa [#allocation6], 1 }
 0x130   :  { %246 = vsyncpa [#allocation4], 1 }

</bundles_post_ra>
